<compile_context>
chip_gen: v6e
topology: v6e:2x2x1
jax: 0.10.0
libtpu: 0.0.40
codegen_flags: <defaults>
</compile_context>

<pallas_src>
import functools

import jax
import jax.numpy as jnp
from jax.experimental import pallas as pl
from jax.experimental.pallas import tpu as pltpu

# Per-x-block VMEM budget and scoped VMEM limit. Double-buffered input +
# double-buffered output at 8 MiB (= 32 MiB) plus the tiny resident weight
# stays under 48 MiB, which fits every generation incl. v7x (64 MiB physical).
_MAX_BLOCK_BYTES = 8 * 1024 * 1024
_VMEM_LIMIT_BYTES = 48 * 1024 * 1024


def _pmsnorm_kernel(x_ref, w_ref, o_ref, *, eps):
    # x_ref: (tile_rows, hidden)  w_ref: (1, hidden) f32  o_ref: (tile_rows, hidden)
    xf = x_ref[...].astype(jnp.float32)
    # f32 accumulation of mean(x^2); rsqrt goes to the EUP (free bundle slot).
    mean_sq = jnp.mean(xf * xf, axis=-1, keepdims=True)
    inv = jax.lax.rsqrt(mean_sq + eps)
    # Normalize and scale in f32, cast only at the very end (matches the
    # reference / PyTorch semantics for low-precision inputs).
    o_ref[...] = ((xf * inv) * w_ref[...]).astype(o_ref.dtype)


def _choose_tile_rows(rows, hidden, dtype):
    """Row tile: dtype-aware sublane multiple, sized by bytes up to the budget."""
    dtype_bytes = jnp.dtype(dtype).itemsize
    # Sublane packing multiple: 8 rows at 32-bit, 16 at 16-bit, 32 at 8-bit.
    mult = max(8, 32 // dtype_bytes)
    row_bytes = hidden * dtype_bytes

    # Guard: a minimum-sublane tile must still fit the double-buffered
    # in+out pipeline (worst case v7x's 64 MiB physical VMEM).
    # TODO(synk): for such extreme hidden sizes, add a second (reduction) grid
    # axis over hidden with a running sum-of-squares instead of erroring.
    if 4 * mult * row_bytes > _VMEM_LIMIT_BYTES:
        raise ValueError(
            f"hidden={hidden} with dtype={dtype} is too large for the "
            "single-pass row-tiled PMSNorm kernel; split the hidden dim.")

    if rows * row_bytes <= _MAX_BLOCK_BYTES:
        # Whole input fits in one block. A full-extent block is always legal
        # (no sublane-multiple requirement) and one grid step is optimal.
        return rows
    # Otherwise: largest sublane-aligned tile under the byte budget.
    return max(mult, ((_MAX_BLOCK_BYTES // row_bytes) // mult) * mult)


def pmsnorm(x, weight, eps=1e-5, tile_rows=None):
    """x: (..., hidden), weight: (hidden,). Returns same shape/dtype as x."""
    orig_shape = x.shape
    hidden = orig_shape[-1]
    rows = 1
    for d in orig_shape[:-1]:
        rows *= d

    x2d = x.reshape(rows, hidden)
    # Pre-cast the tiny weight to f32 in the wrapper so the VMEM-resident
    # copy is already in the multiply dtype (no per-grid-step cast).
    w2d = weight.astype(jnp.float32).reshape(1, hidden)

    tr = tile_rows if tile_rows is not None else _choose_tile_rows(
        rows, hidden, x.dtype)

    # No padding / slicing: rows are independent, so Pallas' masking of the
    # partial last block is sufficient (garbage rows' stores are dropped).
    grid_rows = pl.cdiv(rows, tr)

    dtype_bytes = jnp.dtype(x.dtype).itemsize
    cost = pl.CostEstimate(
        flops=4 * rows * hidden,              # square, sum, scale, weight mul
        transcendentals=rows,                 # one rsqrt per row
        bytes_accessed=2 * rows * hidden * dtype_bytes + 4 * hidden,
    )

    kernel = functools.partial(_pmsnorm_kernel, eps=eps)

    out2d = pl.pallas_call(
        kernel,
        out_shape=jax.ShapeDtypeStruct((rows, hidden), x.dtype),
        grid_spec=pltpu.PrefetchScalarGridSpec(
            num_scalar_prefetch=0,
            grid=(grid_rows,),
            in_specs=[
                pl.BlockSpec((tr, hidden), lambda i: (i, 0)),
                # Constant block index -> the pipeliner keeps the weight
                # resident in VMEM instead of re-DMAing it every grid step.
                pl.BlockSpec((1, hidden), lambda i: (0, 0)),
            ],
            out_specs=pl.BlockSpec((tr, hidden), lambda i: (i, 0)),
        ),
        compiler_params=pltpu.CompilerParams(
            # TODO(synk): on v7x, sweep pltpu.CORE_PARALLEL on this axis so the
            # row grid shards across both TensorCores' DMA paths.
            dimension_semantics=("parallel",),
            vmem_limit_bytes=_VMEM_LIMIT_BYTES,
        ),
        cost_estimate=cost,
    )(x2d, w2d)

    return out2d.reshape(orig_shape)


def pmsnorm_reference(x, weight, eps=1e-5):
    xf = x.astype(jnp.float32)
    inv = jax.lax.rsqrt(jnp.mean(xf * xf, axis=-1, keepdims=True) + eps)
    return (weight.astype(jnp.float32) * (xf * inv)).astype(x.dtype)


if __name__ == "__main__":
    # Small shapes consistent with the module: batch=2, seq=8,
    # hidden=512 (Config.hidden_size default), eps=1e-5.
    batch, seq, hidden = 2, 8, 512
    eps = 1e-5

    key = jax.random.PRNGKey(0)
    x = jax.random.normal(key, (batch, seq, hidden), dtype=jnp.float32)
    # Deterministic parameter init matching nn.Parameter(torch.ones(hidden_size)).
    weight = jnp.ones((hidden,), dtype=jnp.float32)

    out = jax.block_until_ready(pmsnorm(x, weight, eps=eps))
    ref = pmsnorm_reference(x, weight, eps=eps)
    assert out.shape == x.shape and out.dtype == x.dtype
    assert jnp.allclose(out, ref, atol=1e-5, rtol=1e-5)

    # Ragged rows with an explicit small tile -> exercises the masked partial
    # last block (grid = cdiv(21, 8) = 3, last block has 5 valid rows).
    xr = jax.random.normal(jax.random.PRNGKey(1), (3, 7, hidden),
                           dtype=jnp.float32)
    outr = jax.block_until_ready(pmsnorm(xr, weight, eps=eps, tile_rows=8))
    refr = pmsnorm_reference(xr, weight, eps=eps)
    assert outr.shape == xr.shape and outr.dtype == xr.dtype
    assert jnp.allclose(outr, refr, atol=1e-5, rtol=1e-5)

    # bf16 path: f32 accumulation + f32 normalize/scale, single final cast.
    xb = jax.random.normal(jax.random.PRNGKey(2), (3, 7, hidden),
                           dtype=jnp.bfloat16)
    outb = jax.block_until_ready(pmsnorm(xb, weight, eps=eps, tile_rows=16))
    refb = pmsnorm_reference(xb, weight, eps=eps)
    assert outb.shape == xb.shape and outb.dtype == xb.dtype
    assert jnp.allclose(outb.astype(jnp.float32), refb.astype(jnp.float32),
                        atol=2e-2, rtol=2e-2)

    print("KERNEL_OK")
</pallas_src>

<mosaic_0001>
module attributes {stable_mosaic.version = 11 : i64} {
  func.func @_pmsnorm_kernel(%arg0: i32, %arg1: memref<16x512xf32, #tpu.memory_space<vmem>>, %arg2: memref<1x512xf32, #tpu.memory_space<vmem>>, %arg3: memref<16x512xf32, #tpu.memory_space<vmem>>) attributes {dimension_semantics = [#tpu.dimension_semantics<parallel>], iteration_bounds = array<i64: 1>, scalar_prefetch = 0 : i64, scratch_operands = 0 : i64, tpu.core_type = #tpu.core_type<tc>, window_params = [{transform_indices = @transform_0, window_bounds = array<i64: 16, 512>}, {pipeline_mode = #tpu.pipeline_mode<synchronous>, transform_indices = @transform_1, window_bounds = array<i64: 1, 512>}, {transform_indices = @transform_2, window_bounds = array<i64: 16, 512>}]} {
    %c0 = arith.constant 0 : index
    %c0_0 = arith.constant 0 : index
    %0 = vector.load %arg1[%c0, %c0_0] : memref<16x512xf32, #tpu.memory_space<vmem>>, vector<16x512xf32>
    %1 = arith.mulf %0, %0 : vector<16x512xf32>
    %cst = arith.constant dense<0.000000e+00> : vector<16xf32>
    %2 = vector.multi_reduction <add>, %1, %cst [1] : vector<16x512xf32> to vector<16xf32>
    %3 = vector.shape_cast %2 : vector<16xf32> to vector<16x1xf32>
    %cst_1 = arith.constant 5.120000e+02 : f32
    %4 = vector.broadcast %cst_1 : f32 to vector<16x1xf32>
    %5 = arith.divf %3, %4 : vector<16x1xf32>
    %cst_2 = arith.constant 9.99999974E-6 : f32
    %6 = vector.broadcast %cst_2 : f32 to vector<16x1xf32>
    %7 = arith.addf %5, %6 : vector<16x1xf32>
    %8 = math.rsqrt %7 : vector<16x1xf32>
    %9 = vector.broadcast %8 : vector<16x1xf32> to vector<16x512xf32>
    %10 = arith.mulf %0, %9 : vector<16x512xf32>
    %c0_3 = arith.constant 0 : index
    %c0_4 = arith.constant 0 : index
    %11 = vector.load %arg2[%c0_3, %c0_4] : memref<1x512xf32, #tpu.memory_space<vmem>>, vector<1x512xf32>
    %12 = vector.broadcast %11 : vector<1x512xf32> to vector<16x512xf32>
    %13 = arith.mulf %10, %12 : vector<16x512xf32>
    %c0_5 = arith.constant 0 : index
    %c0_6 = arith.constant 0 : index
    %14 = vector.load %arg3[%c0_5, %c0_6] : memref<16x512xf32, #tpu.memory_space<vmem>>, vector<16x512xf32>
    tpu.vector_store %arg3[%c0_5, %c0_6], %13 {strides = array<i32>} : memref<16x512xf32, #tpu.memory_space<vmem>>, vector<16x512xf32>,
    return
  }
  func.func @transform_0(%arg0: i32) -> (i32, i32) {
    %c0_i32 = arith.constant 0 : i32
    %c0_i32_0 = arith.constant 0 : i32
    return %arg0, %c0_i32 : i32, i32
  }
  func.func @transform_1(%arg0: i32) -> (i32, i32) {
    %c0_i32 = arith.constant 0 : i32
    %c0_i32_0 = arith.constant 0 : i32
    %c0_i32_1 = arith.constant 0 : i32
    return %c0_i32, %c0_i32_0 : i32, i32
  }
  func.func @transform_2(%arg0: i32) -> (i32, i32) {
    %c0_i32 = arith.constant 0 : i32
    %c0_i32_0 = arith.constant 0 : i32
    return %arg0, %c0_i32 : i32, i32
  }
}

</mosaic_0001>

<bundles_post_ra>
// kernel: tpu_custom_call.1
= control target key start
LH: loop header
LB: loop body
LE: loop exit
PB: predicated region body
PF: predicated region fallthrough
CT: control target
= control target key end

     0   :  { %7 = vsyncpa [#allocation3], 0  ;;  %s245_s0 = inlined_call_operand.hbm [shape: f32[16,512], index: 0, kind: input, shape index: {}]   ;;  %s246_s1 = inlined_call_operand.hbm [shape: f32[1,512], index: 1, kind: input, shape index: {}]   ;;  %s247_s2 = inlined_call_operand.hbm [shape: f32[16,512], index: 2, kind: output, shape index: {}]  }
   0x1   :  { %8 = vsyncpa [#allocation6], 0 }
   0x2   :  { %9 = vsyncpa [#allocation4], 0  ;;  %s210_s9 = smov [#allocation2]  }
   0x3   :  { %s15_s10 = sshll.u32 %s210_s9, 4  ;;  %s16_s10 = int_to_ptr.vmem [resolvable:$true] %s15_s10 }
   0x4   :  { %s152_s11 = scalar_lea.vmem %s16_s10, 1024  ;;  %p157_p1 = scmp.lt.s32.totalorder %s16_s10, %s16_s10 }
   0x5   :  { %p153_p0 = scmp.ne.s32.totalorder %s16_s10, %s152_s11  ;;  %p158_p2 = scmp.lt.s32.totalorder %s152_s11, %s152_s11 }
   0x7   :  { %p159_p3 = por %p158_p2, %p157_p1 }
   0x9   :  { %p160_p4 = pnand %p159_p3, %p153_p0 }
   0xb   :  { %163 = shalt.err (!%p160_p4)
}
   0xc   :  { %s211_s12 = smov 512   ;;  %s212_s13 = smov 32  }
   0xd   :  { %21 = dma.hbm_to_vmem [thread:$0]  %s245_s0, 1024, %s16_s10, [#allocation3], %s211_s12, %s211_s12, %s212_s13  }
   0xe   :  { %s213_s16 = smov [#allocation5]  }
   0xf   :  { %s28_s17 = sshll.u32 %s213_s16, 4  ;;  %s29_s17 = int_to_ptr.vmem [resolvable:$true] %s28_s17 }
  0x10   :  { %s172_s18 = scalar_lea.vmem %s29_s17, 64  ;;  %p177_p6 = scmp.lt.s32.totalorder %s29_s17, %s29_s17 }
  0x11   :  { %p173_p5 = scmp.ne.s32.totalorder %s29_s17, %s172_s18  ;;  %p178_p7 = scmp.lt.s32.totalorder %s172_s18, %s172_s18 }
  0x13   :  { %p179_p8 = por %p178_p7, %p177_p6 }
  0x15   :  { %p180_p9 = pnand %p179_p8, %p173_p5 }
  0x17   :  { %183 = shalt.err (!%p180_p9)
}
  0x18   :  { %31 = dma.hbm_to_vmem [thread:$0]  %s246_s1, 64, %s29_s17, [#allocation6]  }
  0x19   :  { %204 = dma.done.wait [#allocation3], 1024  }
  0x1a   :  { %205 = vsyncadd [#allocation3], 4294966272 }
  0x1b   :  { %206 = dma.done.wait [#allocation6], 64  }
  0x1c   :  { %207 = vsyncadd [#allocation6], 4294967232  ;;  %v38_v0 = vld [vmem:[#allocation2] sm:$0xff]  ;;  %v39_v1 = vld [vmem:[#allocation2 + $0x8] sm:$0xff]  ;;  %v81_v27 = vlaneseq  ;;  %s214_s0 = smov [#allocation7]  }
  0x1d   :  { %v40_v2 = vld [vmem:[#allocation2 + $0x10] sm:$0xff]  ;;  %v41_v3 = vld [vmem:[#allocation2 + $0x18] sm:$0xff]  ;;  %v46_v4 = vmul.f32 %v38_v0, %v38_v0  ;;  %v47_v5 = vmul.f32 %v39_v1, %v39_v1  ;;  %v42_v7 = vld [vmem:[#allocation2 + $0x20] sm:$0xff]  ;;  %s122_s1 = sshll.u32 %s214_s0, 4  ;;  %s123_s1 = int_to_ptr.vmem [resolvable:$true] %s122_s1 }
  0x1e   :  { %v48_v6 = vmul.f32 %v40_v2, %v40_v2  ;;  %v43_v8 = vld [vmem:[#allocation2 + $0x28] sm:$0xff]  ;;  %v44_v9 = vld [vmem:[#allocation2 + $0x30] sm:$0xff]  ;;  %v45_v10 = vld [vmem:[#allocation2 + $0x38] sm:$0xff]  ;;  %v50_v11 = vmul.f32 %v42_v7, %v42_v7  ;;  %v49_v13 = vmul.f32 %v41_v3, %v41_v3  ;;  %v82_v29 = vshrl.u32 %v81_v27, 7  ;;  %s184_s21 = scalar_lea.vmem %s123_s1, 1024  ;;  %p189_p11 = scmp.lt.s32.totalorder %s123_s1, %s123_s1 }
  0x1f   :  { %v51_v12 = vmul.f32 %v43_v8, %v43_v8  ;;  %v54_v14 = vadd.f32 %v47_v5, %v46_v4  ;;  %v52_v15 = vmul.f32 %v44_v9, %v44_v9  ;;  %v53_v18 = vmul.f32 %v45_v10, %v45_v10  ;;  %v79_v34 = vld [vmem:[#allocation5] sm:$0xf]  ;;  %p185_p10 = scmp.ne.s32.totalorder %s123_s1, %s184_s21  ;;  %p190_p12 = scmp.lt.s32.totalorder %s184_s21, %s184_s21 }
  0x20   :  { %v83_v30 = vsub.s32 0, %v82_v29  ;;  %v87_v31 = vsub.s32 1, %v82_v29  ;;  %v91_v32 = vsub.s32 2, %v82_v29  ;;  %v95_v33 = vsub.s32 3, %v82_v29 }
  0x21   :  { %v59_v16 = vadd.f32 %v51_v12, %v50_v11  ;;  %v55_v17 = vadd.f32 %v54_v14, %v48_v6  ;;  %p191_p13 = por %p190_p12, %p189_p11 }
  0x22   :  { %v84_v35 = vrot.slane %v79_v34, %v83_v30  ;;  %v88_v36 = vrot.slane %v79_v34, %v87_v31  ;;  %v92_v37 = vrot.slane %v79_v34, %v91_v32  ;;  %v96_v38 = vrot.slane %v79_v34, %v95_v33 }
  0x23   :  { %v60_v19 = vadd.f32 %v59_v16, %v52_v15  ;;  %v56_v20 = vadd.f32 %v55_v17, %v49_v13  ;;  %p192_p0 = pnand %p191_p13, %p185_p10 }
  0x25   :  { %57 = vadd.xlane.f32.xlu0 %v56_v20  ;;  %v61_v21 = vadd.f32 %v60_v19, %v53_v18 }
  0x29   :  { %62 = vadd.xlane.f32.xlu0 %v61_v21 }
  0xae   :  { %v58_v22 = vpop.xlane.xlu0 %57 }
  0xaf   :  { %v65_v23 = vmul.f32 0.001953125, %v58_v22 }
  0xb1   :  { %v67_v24 = vadd.f32 1e-05, %v65_v23 }
  0xb2   :  { %v63_v25 = vpop.xlane.xlu0 %62 }
  0xb3   :  { %140 = vrsqrt.f32 %v67_v24  ;;  %v66_v26 = vmul.f32 0.001953125, %v63_v25 }
  0xb5   :  { %v68_v28 = vadd.f32 1e-05, %v66_v26 }
  0xb7   :  { %142 = vrsqrt.f32 %v68_v28 }
  0xc0   :  { %v141_v39 = vpop.eup %140 }
  0xc1   :  { %v71_v40 = vmul.f32 %v141_v39, %v38_v0  ;;  %v72_v41 = vmul.f32 %v141_v39, %v39_v1  ;;  %v73_v42 = vmul.f32 %v141_v39, %v40_v2  ;;  %v74_v43 = vmul.f32 %v141_v39, %v41_v3 }
  0xc3   :  { %v101_v44 = vmul.f32 %v84_v35, %v71_v40  ;;  %v102_v45 = vmul.f32 %v88_v36, %v72_v41  ;;  %v103_v46 = vmul.f32 %v92_v37, %v73_v42  ;;  %v104_v47 = vmul.f32 %v96_v38, %v74_v43 }
  0xc4   :  { %v143_v48 = vpop.eup %142 }
  0xc5   :  { %v75_v49 = vmul.f32 %v143_v48, %v42_v7  ;;  %v76_v50 = vmul.f32 %v143_v48, %v43_v8  ;;  %v77_v51 = vmul.f32 %v143_v48, %v44_v9  ;;  %v78_v52 = vmul.f32 %v143_v48, %v45_v10  ;;  %109 = vst [vmem:[#allocation7] sm:$0xff] %v101_v44 }
  0xc6   :  { %110 = vst [vmem:[#allocation7 + $0x8] sm:$0xff] %v102_v45  ;;  %111 = vst [vmem:[#allocation7 + $0x10] sm:$0xff] %v103_v46 }
  0xc7   :  { %112 = vst [vmem:[#allocation7 + $0x18] sm:$0xff] %v104_v47  ;;  %v105_v53 = vmul.f32 %v84_v35, %v75_v49  ;;  %v106_v54 = vmul.f32 %v88_v36, %v76_v50  ;;  %v107_v55 = vmul.f32 %v92_v37, %v77_v51  ;;  %v108_v56 = vmul.f32 %v96_v38, %v78_v52 }
  0xc9   :  { %113 = vst [vmem:[#allocation7 + $0x20] sm:$0xff] %v105_v53  ;;  %114 = vst [vmem:[#allocation7 + $0x28] sm:$0xff] %v106_v54 }
  0xca   :  { %115 = vst [vmem:[#allocation7 + $0x30] sm:$0xff] %v107_v55  ;;  %116 = vst [vmem:[#allocation7 + $0x38] sm:$0xff] %v108_v56 }
  0xcb   :  { %195 = shalt.err (!%p192_p0)
}
  0xcc   :  { %128 = dma.vmem_to_hbm [thread:$0]  %s123_s1, 1024, %s247_s2, [#allocation4], %s211_s12, %s211_s12, %s212_s13  }
  0xcd   :  { %208 = dma.done.wait [#allocation4], 1024  }
  0xce   :  { %209 = vsyncadd [#allocation4], 4294966272 }
  0xcf   :  { %132 = vsyncpa [#allocation3], 1 }
  0xd0   :  { %133 = vsyncpa [#allocation6], 1 }
  0xd1   :  { %134 = vsyncpa [#allocation4], 1 }

</bundles_post_ra>
